<compile_context>
chip_gen: v7x
topology: tpu7x:2x2x1
jax: 0.10.0
libtpu: 0.0.40
codegen_flags: <defaults>
</compile_context>

<pallas_src>
import jax
import jax.numpy as jnp
from jax.experimental import pallas as pl
from jax.experimental.pallas import tpu as pltpu

SUBLANE = 8
HIDDEN = 256


def _round_up(x, m):
    return ((x + m - 1) // m) * m


def actor_kernel(x_ref, w1_ref, b1_ref, w2_ref, b2_ref, w3_ref, b3_ref, o_ref):
    # x: (TB, S) f32 -> cast activations to bf16, feed bf16 weights to the MXU.
    x = x_ref[...].astype(jnp.bfloat16)

    # layer 1: (TB, S) @ (S, 256) -> f32, +bias, sigmoid
    h = jnp.dot(x, w1_ref[...], preferred_element_type=jnp.float32) + b1_ref[...]
    h = jax.nn.sigmoid(h)

    # layer 2: (TB, 256) @ (256, 256)
    h = jnp.dot(h.astype(jnp.bfloat16), w2_ref[...],
                preferred_element_type=jnp.float32) + b2_ref[...]
    h = jax.nn.sigmoid(h)

    # layer 3: (TB, 256) @ (256, A), sigmoid, * 12
    h = jnp.dot(h.astype(jnp.bfloat16), w3_ref[...],
                preferred_element_type=jnp.float32) + b3_ref[...]
    h = jax.nn.sigmoid(h) * 12.0

    o_ref[...] = h.astype(o_ref.dtype)


def actor_forward(state, params, *, batch_tile=512):
    """state: (B, state_dim) f32; params: dict of w1,b1,w2,b2,w3,b3 (weights bf16, biases f32)."""
    B, S = state.shape
    H = params["w1"].shape[1]
    A = params["w3"].shape[1]

    # Batch tile: sublane-aligned, capped at batch_tile, ~half the batch so the
    # "parallel" grid axis has >=2 steps on dual-TC chips (v7x) for larger B.
    TB = max(SUBLANE, _round_up(-(-B // 2), SUBLANE))
    TB = min(TB, batch_tile)

    # Pad batch only to a sublane multiple (cheap / usually a no-op); the last
    # grid tile may be ragged and Pallas masks the out-of-bounds stores.
    B_pad = _round_up(B, SUBLANE)
    x = state if B_pad == B else jnp.pad(state, ((0, B_pad - B), (0, 0)))

    w1, b1 = params["w1"], params["b1"]
    w2, b2 = params["w2"], params["b2"]
    w3, b3 = params["w3"], params["b3"]

    grid = (pl.cdiv(B_pad, TB),)

    weight_bytes = (w1.size * w1.dtype.itemsize + w2.size * w2.dtype.itemsize
                    + w3.size * w3.dtype.itemsize
                    + (b1.size + b2.size + b3.size) * 4)
    cost = pl.CostEstimate(
        flops=2 * B_pad * (S * H + H * H + H * A),
        transcendentals=B_pad * (H + H + A),
        bytes_accessed=B_pad * S * 4 + weight_bytes + B_pad * A * 4,
    )

    out = pl.pallas_call(
        actor_kernel,
        out_shape=jax.ShapeDtypeStruct((B_pad, A), jnp.float32),
        grid=grid,
        in_specs=[
            pl.BlockSpec((TB, S), lambda i: (i, 0)),   # state: tiled along batch
            pl.BlockSpec((S, H), lambda i: (0, 0)),    # w1: VMEM-resident across grid
            pl.BlockSpec((1, H), lambda i: (0, 0)),    # b1
            pl.BlockSpec((H, H), lambda i: (0, 0)),    # w2
            pl.BlockSpec((1, H), lambda i: (0, 0)),    # b2
            pl.BlockSpec((H, A), lambda i: (0, 0)),    # w3
            pl.BlockSpec((1, A), lambda i: (0, 0)),    # b3
        ],
        out_specs=pl.BlockSpec((TB, A), lambda i: (i, 0)),
        compiler_params=pltpu.CompilerParams(
            dimension_semantics=("parallel",)),
        cost_estimate=cost,
    )(x, w1, b1, w2, b2, w3, b3)

    return out if B_pad == B else out[:B]


def init_actor_params(key, state_dim, action_dim, weight_dtype=jnp.bfloat16):
    """Deterministic init mimicking torch.nn.Linear default (U[-1/sqrt(fan_in), +1/sqrt(fan_in)]).

    Weights are stored pre-transposed (in, out) and pre-cast to bf16 once here, so the
    per-call wrapper does zero parameter work. Biases stay f32 with shape (1, out)."""
    def linear(key, fan_in, fan_out):
        kw, kb = jax.random.split(key)
        bound = 1.0 / jnp.sqrt(jnp.float32(fan_in))
        w = jax.random.uniform(kw, (fan_in, fan_out), jnp.float32, -bound, bound)
        b = jax.random.uniform(kb, (1, fan_out), jnp.float32, -bound, bound)
        return w.astype(weight_dtype), b

    k1, k2, k3 = jax.random.split(key, 3)
    w1, b1 = linear(k1, state_dim, HIDDEN)
    w2, b2 = linear(k2, HIDDEN, HIDDEN)
    w3, b3 = linear(k3, HIDDEN, action_dim)
    return {"w1": w1, "b1": b1, "w2": w2, "b2": b2, "w3": w3, "b3": b3}


def actor_ref(state, params):
    """Pure-JAX reference mirroring the kernel's bf16-matmul / f32-epilogue math."""
    def dense(x, w, b):
        y = jnp.dot(x.astype(jnp.bfloat16), w, preferred_element_type=jnp.float32)
        return y + b.astype(jnp.float32)

    h = jax.nn.sigmoid(dense(state, params["w1"], params["b1"]))
    h = jax.nn.sigmoid(dense(h, params["w2"], params["b2"]))
    h = jax.nn.sigmoid(dense(h, params["w3"], params["b3"]))
    return h * 12.0


if __name__ == "__main__":
    B, state_dim, action_dim = 2, 32, 8

    key = jax.random.PRNGKey(0)
    k_params, k_state, k_big = jax.random.split(key, 3)

    params = init_actor_params(k_params, state_dim, action_dim)
    state = jax.random.normal(k_state, (B, state_dim), jnp.float32)

    fwd = jax.jit(actor_forward)

    # small-batch correctness check (single grid step, batch padded 2 -> 8)
    out = jax.block_until_ready(fwd(state, params))
    ref = actor_ref(state, params)
    assert out.shape == (B, action_dim)
    assert jnp.allclose(out, ref, atol=1e-4, rtol=1e-4), "mismatch vs reference (small batch)"

    # larger batch exercising multiple batch tiles (ragged last tile) with resident weights
    big_state = jax.random.normal(k_big, (600, state_dim), jnp.float32)
    out_big = jax.block_until_ready(fwd(big_state, params))
    ref_big = actor_ref(big_state, params)
    assert out_big.shape == (600, action_dim)
    assert jnp.allclose(out_big, ref_big, atol=1e-4, rtol=1e-4), "mismatch vs reference (big batch)"

    print("KERNEL_OK")
</pallas_src>

<mosaic_0001>
module attributes {stable_mosaic.version = 11 : i64} {
  func.func @actor_kernel(%arg0: i32, %arg1: memref<8x32xf32, #tpu.memory_space<vmem>>, %arg2: memref<32x256xbf16, #tpu.memory_space<vmem>>, %arg3: memref<1x256xf32, #tpu.memory_space<vmem>>, %arg4: memref<256x256xbf16, #tpu.memory_space<vmem>>, %arg5: memref<1x256xf32, #tpu.memory_space<vmem>>, %arg6: memref<256x8xbf16, #tpu.memory_space<vmem>>, %arg7: memref<1x8xf32, #tpu.memory_space<vmem>>, %arg8: memref<8x8xf32, #tpu.memory_space<vmem>>) attributes {dimension_semantics = [#tpu.dimension_semantics<parallel>], iteration_bounds = array<i64: 1>, scalar_prefetch = 0 : i64, scratch_operands = 0 : i64, tpu.core_type = #tpu.core_type<tc>, window_params = [{transform_indices = @transform_0, window_bounds = array<i64: 8, 32>}, {pipeline_mode = #tpu.pipeline_mode<synchronous>, transform_indices = @transform_1, window_bounds = array<i64: 32, 256>}, {pipeline_mode = #tpu.pipeline_mode<synchronous>, transform_indices = @transform_2, window_bounds = array<i64: 1, 256>}, {pipeline_mode = #tpu.pipeline_mode<synchronous>, transform_indices = @transform_3, window_bounds = array<i64: 256, 256>}, {pipeline_mode = #tpu.pipeline_mode<synchronous>, transform_indices = @transform_4, window_bounds = array<i64: 1, 256>}, {pipeline_mode = #tpu.pipeline_mode<synchronous>, transform_indices = @transform_5, window_bounds = array<i64: 256, 8>}, {pipeline_mode = #tpu.pipeline_mode<synchronous>, transform_indices = @transform_6, window_bounds = array<i64: 1, 8>}, {transform_indices = @transform_7, window_bounds = array<i64: 8, 8>}]} {
    %c0 = arith.constant 0 : index
    %c0_0 = arith.constant 0 : index
    %0 = vector.load %arg1[%c0, %c0_0] : memref<8x32xf32, #tpu.memory_space<vmem>>, vector<8x32xf32>
    %1 = arith.truncf %0 : vector<8x32xf32> to vector<8x32xbf16>
    %c0_1 = arith.constant 0 : index
    %c0_2 = arith.constant 0 : index
    %2 = vector.load %arg2[%c0_1, %c0_2] : memref<32x256xbf16, #tpu.memory_space<vmem>>, vector<32x256xbf16>
    %cst = arith.constant dense<0.000000e+00> : vector<8x256xf32>
    %3 = tpu.matmul %1, %2, %cst {dimension_numbers = #tpu.dot_dimension_numbers<[1], [0], [0], [1], [0, 0, 1, 1], [], []>} : vector<8x32xbf16>, vector<32x256xbf16>, vector<8x256xf32> -> vector<8x256xf32>
    %c0_3 = arith.constant 0 : index
    %c0_4 = arith.constant 0 : index
    %4 = vector.load %arg3[%c0_3, %c0_4] : memref<1x256xf32, #tpu.memory_space<vmem>>, vector<1x256xf32>
    %5 = vector.broadcast %4 : vector<1x256xf32> to vector<8x256xf32>
    %6 = arith.addf %3, %5 : vector<8x256xf32>
    %7 = arith.negf %6 : vector<8x256xf32>
    %8 = math.exp %7 : vector<8x256xf32>
    %cst_5 = arith.constant 1.000000e+00 : f32
    %9 = vector.broadcast %cst_5 : f32 to vector<8x256xf32>
    %10 = arith.addf %9, %8 : vector<8x256xf32>
    %11 = arith.divf %9, %10 : vector<8x256xf32>
    %12 = arith.truncf %11 : vector<8x256xf32> to vector<8x256xbf16>
    %c0_6 = arith.constant 0 : index
    %c0_7 = arith.constant 0 : index
    %13 = vector.load %arg4[%c0_6, %c0_7] : memref<256x256xbf16, #tpu.memory_space<vmem>>, vector<256x256xbf16>
    %cst_8 = arith.constant dense<0.000000e+00> : vector<8x256xf32>
    %14 = tpu.matmul %12, %13, %cst_8 {dimension_numbers = #tpu.dot_dimension_numbers<[1], [0], [0], [1], [0, 0, 1, 1], [], []>} : vector<8x256xbf16>, vector<256x256xbf16>, vector<8x256xf32> -> vector<8x256xf32>
    %c0_9 = arith.constant 0 : index
    %c0_10 = arith.constant 0 : index
    %15 = vector.load %arg5[%c0_9, %c0_10] : memref<1x256xf32, #tpu.memory_space<vmem>>, vector<1x256xf32>
    %16 = vector.broadcast %15 : vector<1x256xf32> to vector<8x256xf32>
    %17 = arith.addf %14, %16 : vector<8x256xf32>
    %18 = arith.negf %17 : vector<8x256xf32>
    %19 = math.exp %18 : vector<8x256xf32>
    %cst_11 = arith.constant 1.000000e+00 : f32
    %20 = vector.broadcast %cst_11 : f32 to vector<8x256xf32>
    %21 = arith.addf %20, %19 : vector<8x256xf32>
    %22 = arith.divf %20, %21 : vector<8x256xf32>
    %23 = arith.truncf %22 : vector<8x256xf32> to vector<8x256xbf16>
    %c0_12 = arith.constant 0 : index
    %c0_13 = arith.constant 0 : index
    %24 = vector.load %arg6[%c0_12, %c0_13] : memref<256x8xbf16, #tpu.memory_space<vmem>>, vector<256x8xbf16>
    %cst_14 = arith.constant dense<0.000000e+00> : vector<8x8xf32>
    %25 = tpu.matmul %23, %24, %cst_14 {dimension_numbers = #tpu.dot_dimension_numbers<[1], [0], [0], [1], [0, 0, 1, 1], [], []>} : vector<8x256xbf16>, vector<256x8xbf16>, vector<8x8xf32> -> vector<8x8xf32>
    %c0_15 = arith.constant 0 : index
    %c0_16 = arith.constant 0 : index
    %26 = vector.load %arg7[%c0_15, %c0_16] : memref<1x8xf32, #tpu.memory_space<vmem>>, vector<1x8xf32>
    %27 = vector.broadcast %26 : vector<1x8xf32> to vector<8x8xf32>
    %28 = arith.addf %25, %27 : vector<8x8xf32>
    %29 = arith.negf %28 : vector<8x8xf32>
    %30 = math.exp %29 : vector<8x8xf32>
    %cst_17 = arith.constant 1.000000e+00 : f32
    %31 = vector.broadcast %cst_17 : f32 to vector<8x8xf32>
    %32 = arith.addf %31, %30 : vector<8x8xf32>
    %33 = arith.divf %31, %32 : vector<8x8xf32>
    %cst_18 = arith.constant 1.200000e+01 : f32
    %34 = vector.broadcast %cst_18 : f32 to vector<8x8xf32>
    %35 = arith.mulf %33, %34 : vector<8x8xf32>
    %c0_19 = arith.constant 0 : index
    %c0_20 = arith.constant 0 : index
    %36 = vector.load %arg8[%c0_19, %c0_20] : memref<8x8xf32, #tpu.memory_space<vmem>>, vector<8x8xf32>
    tpu.vector_store %arg8[%c0_19, %c0_20], %35 {strides = array<i32>} : memref<8x8xf32, #tpu.memory_space<vmem>>, vector<8x8xf32>,
    return
  }
  func.func @transform_0(%arg0: i32) -> (i32, i32) {
    %c0_i32 = arith.constant 0 : i32
    %c0_i32_0 = arith.constant 0 : i32
    return %arg0, %c0_i32 : i32, i32
  }
  func.func @transform_1(%arg0: i32) -> (i32, i32) {
    %c0_i32 = arith.constant 0 : i32
    %c0_i32_0 = arith.constant 0 : i32
    %c0_i32_1 = arith.constant 0 : i32
    return %c0_i32, %c0_i32_0 : i32, i32
  }
  func.func @transform_2(%arg0: i32) -> (i32, i32) {
    %c0_i32 = arith.constant 0 : i32
    %c0_i32_0 = arith.constant 0 : i32
    %c0_i32_1 = arith.constant 0 : i32
    return %c0_i32, %c0_i32_0 : i32, i32
  }
  func.func @transform_3(%arg0: i32) -> (i32, i32) {
    %c0_i32 = arith.constant 0 : i32
    %c0_i32_0 = arith.constant 0 : i32
    %c0_i32_1 = arith.constant 0 : i32
    return %c0_i32, %c0_i32_0 : i32, i32
  }
  func.func @transform_4(%arg0: i32) -> (i32, i32) {
    %c0_i32 = arith.constant 0 : i32
    %c0_i32_0 = arith.constant 0 : i32
    %c0_i32_1 = arith.constant 0 : i32
    return %c0_i32, %c0_i32_0 : i32, i32
  }
  func.func @transform_5(%arg0: i32) -> (i32, i32) {
    %c0_i32 = arith.constant 0 : i32
    %c0_i32_0 = arith.constant 0 : i32
    %c0_i32_1 = arith.constant 0 : i32
    return %c0_i32, %c0_i32_0 : i32, i32
  }
  func.func @transform_6(%arg0: i32) -> (i32, i32) {
    %c0_i32 = arith.constant 0 : i32
    %c0_i32_0 = arith.constant 0 : i32
    %c0_i32_1 = arith.constant 0 : i32
    return %c0_i32, %c0_i32_0 : i32, i32
  }
  func.func @transform_7(%arg0: i32) -> (i32, i32) {
    %c0_i32 = arith.constant 0 : i32
    %c0_i32_0 = arith.constant 0 : i32
    return %arg0, %c0_i32 : i32, i32
  }
}

</mosaic_0001>

<bundles_post_ra>
// kernel: actor_forward.1
= control target key start
LH: loop header
LB: loop body
LE: loop exit
PB: predicated region body
PF: predicated region fallthrough
CT: control target
= control target key end

     0   :  { %12 = vsyncpa [#allocation3], 0  ;;  %s785_s24 = smov [#allocation2]   ;;  %s920_s0 = inlined_call_operand.vmem [shape: f32[8,32], index: 0, kind: input, shape index: {}]   ;;  %s921_s1 = inlined_call_operand.vmem [shape: bf16[32,256], index: 1, kind: input, shape index: {}]   ;;  %s922_s2 = inlined_call_operand.vmem [shape: f32[1,256], index: 2, kind: input, shape index: {}]   ;;  %s923_s3 = inlined_call_operand.hbm [shape: bf16[256,256], index: 3, kind: input, shape index: {}]   ;;  %s924_s4 = inlined_call_operand.vmem [shape: f32[1,256], index: 4, kind: input, shape index: {}]   ;;  %s925_s5 = inlined_call_operand.vmem [shape: bf16[256,8], index: 5, kind: input, shape index: {}]   ;;  %s926_s6 = inlined_call_operand.vmem [shape: f32[1,8], index: 6, kind: input, shape index: {}]   ;;  %s927_s7 = inlined_call_operand.vmem [shape: f32[8,8], index: 7, kind: output, shape index: {}]  }
   0x1   :  { %s24_s25 = sshll.u32 %s785_s24, 4  ;;  %s761_s28 = scalar_lea.hbm %s923_s3, 4096  ;;  %s25_s25 = int_to_ptr.vmem [resolvable:$true] %s24_s25 }
   0x2   :  { %p762_p0 = scmp.ne.s32.totalorder %s923_s3, %s761_s28  ;;  %p765_p1 = scmp.lt.u32.totalorder %s761_s28, %s923_s3 }
   0x4   :  { %p767_p2 = pnand %p765_p1, %p762_p0 }
   0x6   :  { %770 = shalt.err (!%p767_p2)
}
   0x7   :  { %s771_s10 = scalar_lea.vmem %s25_s25, 4096  ;;  %p776_p4 = scmp.lt.s32.totalorder %s25_s25, %s25_s25 }
   0x8   :  { %p772_p3 = scmp.ne.s32.totalorder %s25_s25, %s771_s10  ;;  %p777_p5 = scmp.lt.s32.totalorder %s771_s10, %s771_s10 }
   0xa   :  { %p778_p6 = por %p777_p5, %p776_p4 }
   0xc   :  { %p779_p7 = pnand %p778_p6, %p772_p3 }
   0xe   :  { %782 = shalt.err (!%p779_p7)
}
   0xf   :  { %s786_s11 = smov 128   ;;  %s787_s12 = smov 8  }
  0x10   :  { %30 = dma.hbm_to_vmem [thread:$0]  %s923_s3, 4096, %s25_s25, [#allocation3], %s786_s11, %s786_s11, %s787_s12  }
  0x11   :  { %783 = dma.done.wait [#allocation3], 4096  }
  0x12   :  { %784 = vsyncadd [#allocation3], 4294963200  ;;  %v788_v0 = vmov 0   ;;  %v671_v1 = vld [vmem:[%s921_s1 + $0x4] ss:$8 sps:$4 sm:$0xff]   ;;  %vm79_vm0 = vcmask 261120   ;;  %v49_v39 = vlaneseq }
  0x13   :  { %115 = vmatprep.mubr.bf16.mxu0 %v788_v0  ;;  %v673_v2 = vld [vmem:[%s921_s1] ss:$8 sps:$4 sm:$0xff]   ;;  %83 = vmatprep.subr.bf16.mxu0 %v671_v1  ;;  %v674_v3 = vld [vmem:[%s921_s1 + $0x14] ss:$8 sps:$4 sm:$0xff]   ;;  %v676_v4 = vld [vmem:[%s921_s1 + $0x10] ss:$8 sps:$4 sm:$0xff]  }
  0x14   :  { %v41_v5 = vld [vmem:[%s920_s0] sm:$0xff]  ;;  %84 = vmatpush1.bf16.msra.mxu0 %v673_v2  ;;  %v680_v8 = vld [vmem:[#allocation2 + $0x14] ss:$8 sps:$4 sm:$0xff]   ;;  %v682_v10 = vld [vmem:[#allocation2 + $0x10] ss:$8 sps:$4 sm:$0xff]   ;;  %v856_v40 = vshrl.u32 %v49_v39, 7 }
  0x15   :  { %v677_v6 = vld [vmem:[#allocation2 + $0x4] ss:$8 sps:$4 sm:$0xff]   ;;  %85 = vmatprep.subr.bf16.mxu0 %v674_v3  ;;  %v679_v7 = vld [vmem:[#allocation2] ss:$8 sps:$4 sm:$0xff]   ;;  %v42_v9 = vpack.c.bf16 %v41_v5, %v41_v5  ;;  %v686_v13 = vld [vmem:[#allocation2 + $0x34] ss:$8 sps:$4 sm:$0xff]  }
  0x16   :  { %342 = vmatprep.subr.bf16.mxu1 %v677_v6  ;;  %v683_v11 = vld [vmem:[#allocation2 + $0x24] ss:$8 sps:$4 sm:$0xff]   ;;  %v685_v12 = vld [vmem:[#allocation2 + $0x20] ss:$8 sps:$4 sm:$0xff]   ;;  %v688_v14 = vld [vmem:[#allocation2 + $0x30] ss:$8 sps:$4 sm:$0xff]  }
  0x17   :  { %343 = vmatpush1.bf16.msra.mxu1 %v679_v7  ;;  %v689_v15 = vld [vmem:[#allocation2 + $0x44] ss:$8 sps:$4 sm:$0xff]   ;;  %v691_v16 = vld [vmem:[#allocation2 + $0x40] ss:$8 sps:$4 sm:$0xff]   ;;  %v692_v17 = vld [vmem:[#allocation2 + $0x54] ss:$8 sps:$4 sm:$0xff]  }
  0x18   :  { %86 = vmatpush1.bf16.msra.mxu0 %v676_v4  ;;  %344 = vmatprep.subr.bf16.mxu1 %v680_v8  ;;  %v694_v18 = vld [vmem:[#allocation2 + $0x50] ss:$8 sps:$4 sm:$0xff]   ;;  %v695_v19 = vld [vmem:[#allocation2 + $0x64] ss:$8 sps:$4 sm:$0xff]   ;;  %v697_v20 = vld [vmem:[#allocation2 + $0x60] ss:$8 sps:$4 sm:$0xff]  }
  0x19   :  { %v698_v21 = vld [vmem:[#allocation2 + $0x74] ss:$8 sps:$4 sm:$0xff]   ;;  %v700_v22 = vld [vmem:[#allocation2 + $0x70] ss:$8 sps:$4 sm:$0xff]   ;;  %v701_v23 = vld [vmem:[#allocation2 + $0x84] ss:$8 sps:$4 sm:$0xff]  }
  0x1a   :  { %v703_v24 = vld [vmem:[#allocation2 + $0x80] ss:$8 sps:$4 sm:$0xff]   ;;  %v704_v25 = vld [vmem:[#allocation2 + $0x94] ss:$8 sps:$4 sm:$0xff]   ;;  %v706_v26 = vld [vmem:[#allocation2 + $0x90] ss:$8 sps:$4 sm:$0xff]  }
  0x1b   :  { %590 = vmatmul.mubr.msk.bf16.vlgmr.msra.gmra.mrb[0].mxu0 %vm79_vm0, %v42_v9  ;;  %345 = vmatpush1.bf16.msra.mxu1 %v682_v10  ;;  %v707_v27 = vld [vmem:[#allocation2 + $0xa4] ss:$8 sps:$4 sm:$0xff]   ;;  %v709_v28 = vld [vmem:[#allocation2 + $0xa0] ss:$8 sps:$4 sm:$0xff]   ;;  %v710_v29 = vld [vmem:[#allocation2 + $0xb4] ss:$8 sps:$4 sm:$0xff]  }
  0x1c   :  { %346 = vmatprep.subr.bf16.mxu1 %v683_v11  ;;  %v712_v30 = vld [vmem:[#allocation2 + $0xb0] ss:$8 sps:$4 sm:$0xff]   ;;  %v713_v31 = vld [vmem:[#allocation2 + $0xc4] ss:$8 sps:$4 sm:$0xff]   ;;  %v715_v32 = vld [vmem:[#allocation2 + $0xc0] ss:$8 sps:$4 sm:$0xff]  }
  0x1d   :  { %v716_v33 = vld [vmem:[#allocation2 + $0xd4] ss:$8 sps:$4 sm:$0xff]   ;;  %v718_v34 = vld [vmem:[#allocation2 + $0xd0] ss:$8 sps:$4 sm:$0xff]   ;;  %v719_v35 = vld [vmem:[#allocation2 + $0xe4] ss:$8 sps:$4 sm:$0xff]  }
  0x1e   :  { %v721_v36 = vld [vmem:[#allocation2 + $0xe0] ss:$8 sps:$4 sm:$0xff]   ;;  %v722_v37 = vld [vmem:[#allocation2 + $0xf4] ss:$8 sps:$4 sm:$0xff]   ;;  %v724_v38 = vld [vmem:[#allocation2 + $0xf0] ss:$8 sps:$4 sm:$0xff]  }
  0x1f   :  { %347 = vmatpush1.bf16.msra.mxu1 %v685_v12  ;;  %v51_v41 = vsub.s32 0, %v856_v40  ;;  %v47_v42 = vld [vmem:[%s922_s2] sm:$0x3]  ;;  %v55_v43 = vsub.s32 1, %v856_v40  ;;  %v727_v0 = vld [vmem:[%s925_s5 + $0x48] sm:$0xff]   ;;  %v729_v2 = vld [vmem:[%s925_s5 + $0x50] sm:$0xff]  }
  0x20   :  { %348 = vmatprep.subr.bf16.mxu1 %v686_v13  ;;  %v725_v62 = vld [vmem:[%s925_s5 + $0x40] sm:$0xff]   ;;  %v728_v1 = vld [vmem:[%s925_s5 + $0x8] sm:$0xff]   ;;  %v730_v3 = vld [vmem:[%s925_s5 + $0x10] sm:$0xff]   ;;  %vm579_vm1 = vcmask 64512  }
  0x21   :  { %v52_v44 = vrot.slane %v47_v42, %v51_v41  ;;  %v56_v45 = vrot.slane %v47_v42, %v55_v43  ;;  %v726_v63 = vld [vmem:[%s925_s5] sm:$0xff]   ;;  %645 = vmatprep.subr.bf16.mxu0 %v725_v62  ;;  %v731_v4 = vld [vmem:[%s925_s5 + $0x58] sm:$0xff]   ;;  %v735_v8 = vld [vmem:[%s925_s5 + $0x68] sm:$0xff]  }
  0x22   :  { %646 = vmatpush3.bf16.msra.mxu0 %v726_v63  ;;  %v732_v5 = vld [vmem:[%s925_s5 + $0x18] sm:$0xff]   ;;  %v733_v6 = vld [vmem:[%s925_s5 + $0x60] sm:$0xff]   ;;  %v736_v9 = vld [vmem:[%s925_s5 + $0x28] sm:$0xff]  }
  0x23   :  { %349 = vmatpush1.bf16.msra.mxu1 %v688_v14  ;;  %647 = vmatprep.subr.bf16.mxu0 %v727_v0  ;;  %v734_v7 = vld [vmem:[%s925_s5 + $0x20] sm:$0xff]   ;;  %v737_v10 = vld [vmem:[%s925_s5 + $0x70] sm:$0xff]   ;;  %v739_v12 = vld [vmem:[%s925_s5 + $0x78] sm:$0xff]  }
  0x24   :  { %350 = vmatprep.subr.bf16.mxu1 %v689_v15  ;;  %v738_v11 = vld [vmem:[%s925_s5 + $0x30] sm:$0xff]   ;;  %v740_v13 = vld [vmem:[%s925_s5 + $0x38] sm:$0xff]   ;;  %v170_v14 = vld [vmem:[%s924_s4] sm:$0x3] }
  0x25   :  { %v175_v15 = vrot.slane %v170_v14, %v51_v41 }
  0x26   :  { %648 = vmatpush3.bf16.msra.mxu0 %v728_v1 }
  0x27   :  { %351 = vmatpush1.bf16.msra.mxu1 %v691_v16  ;;  %649 = vmatprep.subr.bf16.mxu0 %v729_v2  ;;  %v179_v16 = vrot.slane %v170_v14, %v55_v43 }
  0x28   :  { %352 = vmatprep.subr.bf16.mxu1 %v692_v17 }
  0x2a   :  { %650 = vmatpush3.bf16.msra.mxu0 %v730_v3 }
  0x2b   :  { %353 = vmatpush1.bf16.msra.mxu1 %v694_v18  ;;  %651 = vmatprep.subr.bf16.mxu0 %v731_v4 }
  0x2c   :  { %354 = vmatprep.subr.bf16.mxu1 %v695_v19 }
  0x2e   :  { %652 = vmatpush3.bf16.msra.mxu0 %v732_v5 }
  0x2f   :  { %355 = vmatpush1.bf16.msra.mxu1 %v697_v20  ;;  %653 = vmatprep.subr.bf16.mxu0 %v733_v6 }
  0x30   :  { %356 = vmatprep.subr.bf16.mxu1 %v698_v21 }
  0x32   :  { %654 = vmatpush3.bf16.msra.mxu0 %v734_v7 }
  0x33   :  { %357 = vmatpush1.bf16.msra.mxu1 %v700_v22  ;;  %655 = vmatprep.subr.bf16.mxu0 %v735_v8 }
  0x34   :  { %358 = vmatprep.subr.bf16.mxu1 %v701_v23 }
  0x36   :  { %656 = vmatpush3.bf16.msra.mxu0 %v736_v9 }
  0x37   :  { %359 = vmatpush1.bf16.msra.mxu1 %v703_v24  ;;  %657 = vmatprep.subr.bf16.mxu0 %v737_v10 }
  0x38   :  { %360 = vmatprep.subr.bf16.mxu1 %v704_v25 }
  0x3a   :  { %658 = vmatpush3.bf16.msra.mxu0 %v738_v11 }
  0x3b   :  { %361 = vmatpush1.bf16.msra.mxu1 %v706_v26  ;;  %659 = vmatprep.subr.bf16.mxu0 %v739_v12 }
  0x3c   :  { %362 = vmatprep.subr.bf16.mxu1 %v707_v27 }
  0x3e   :  { %660 = vmatpush3.bf16.msra.mxu0 %v740_v13 }
  0x3f   :  { %363 = vmatpush1.bf16.msra.mxu1 %v709_v28 }
  0x40   :  { %364 = vmatprep.subr.bf16.mxu1 %v710_v29 }
  0x43   :  { %365 = vmatpush1.bf16.msra.mxu1 %v712_v30 }
  0x44   :  { %366 = vmatprep.subr.bf16.mxu1 %v713_v31 }
  0x47   :  { %367 = vmatpush1.bf16.msra.mxu1 %v715_v32 }
  0x48   :  { %368 = vmatprep.subr.bf16.mxu1 %v716_v33 }
  0x4b   :  { %369 = vmatpush1.bf16.msra.mxu1 %v718_v34  ;;  %v627_v34 = vld [vmem:[%s926_s6] ss:$0 sm:$0xff] }
  0x4c   :  { %370 = vmatprep.subr.bf16.mxu1 %v719_v35 }
  0x4f   :  { %371 = vmatpush1.bf16.msra.mxu1 %v721_v36 }
  0x50   :  { %372 = vmatprep.subr.bf16.mxu1 %v722_v37 }
  0x53   :  { %373 = vmatpush1.bf16.msra.mxu1 %v724_v38 }
  0xee   :  { %v117_v46 = vpop.f32.mrb[0].mxu0 }
  0xef   :  { %v118_v47 = vadd.f32 %v117_v46, %v52_v44  ;;  %v119_v48 = vpop.f32.mrb[1].mxu0 }
  0xf0   :  { %v120_v49 = vadd.f32 %v119_v48, %v56_v45  ;;  %v121_v50 = vpop.f32.mrb[2].mxu0 }
  0xf1   :  { %v591_v51 = vmul.f32 -1.442695, %v118_v47  ;;  %v122_v52 = vpop.f32.mrb[3].mxu0 }
  0xf2   :  { %v592_v53 = vmul.f32 -1.442695, %v120_v49 }
  0xf3   :  { %741 = vpow2.f32 %v591_v51 }
  0xf4   :  { %743 = vpow2.f32 %v592_v53 }
  0xfd   :  { %v742_v54 = vpop.eup %741 }
  0xfe   :  { %v744_v55 = vpop.eup %743  ;;  %v130_v56 = vadd.f32 1.0, %v742_v54 }
  0xff   :  { %v131_v57 = vadd.f32 1.0, %v744_v55 }
 0x100   :  { %745 = vrcp.f32 %v130_v56 }
 0x101   :  { %747 = vrcp.f32 %v131_v57 }
 0x10a   :  { %v746_v58 = vpop.eup %745 }
 0x10b   :  { %v748_v59 = vpop.eup %747  ;;  %v136_v61 = vpack.c.bf16 %v746_v58, %v746_v58 }
 0x10c   :  { %v137_v60 = vpack.c.bf16 %v748_v59, %v748_v59 }
 0x10e   :  { %374 = vmatprep.mubr.bf16.mxu1 %v137_v60 }
 0x10f   :  { %375 = vmatmul.mubr.bf16.vlgmr.msra.gmra.mrb[0].mxu1 %v136_v61 }
 0x1e2   :  { %v376_v17 = vpop.f32.mrb[0].mxu1 }
 0x1e3   :  { %v377_v18 = vadd.f32 %v376_v17, %v175_v15  ;;  %v378_v19 = vpop.f32.mrb[1].mxu1 }
 0x1e4   :  { %v379_v20 = vadd.f32 %v378_v19, %v179_v16  ;;  %v380_v21 = vpop.f32.mrb[2].mxu1 }
 0x1e5   :  { %v625_v22 = vmul.f32 -1.442695, %v377_v18  ;;  %v381_v23 = vpop.f32.mrb[3].mxu1 }
 0x1e6   :  { %v626_v24 = vmul.f32 -1.442695, %v379_v20 }
 0x1e7   :  { %749 = vpow2.f32 %v625_v22 }
 0x1e8   :  { %751 = vpow2.f32 %v626_v24 }
 0x1f1   :  { %v750_v25 = vpop.eup %749 }
 0x1f2   :  { %v752_v26 = vpop.eup %751  ;;  %v389_v27 = vadd.f32 1.0, %v750_v25 }
 0x1f3   :  { %v390_v28 = vadd.f32 1.0, %v752_v26 }
 0x1f4   :  { %753 = vrcp.f32 %v389_v27 }
 0x1f5   :  { %755 = vrcp.f32 %v390_v28 }
 0x1fe   :  { %v754_v29 = vpop.eup %753 }
 0x1ff   :  { %v756_v30 = vpop.eup %755  ;;  %v395_v32 = vpack.c.bf16 %v754_v29, %v754_v29 }
 0x200   :  { %v396_v31 = vpack.c.bf16 %v756_v30, %v756_v30 }
 0x202   :  { %564 = vmatprep.mubr.bf16.mxu0 %v396_v31 }
 0x203   :  { %565 = vmatmul.mubr.bf16.vlgmr.msra.gmra.mrb[4].mxu0 %v395_v32 }
 0x2d6   :  { %v661_v33 = vpop.f32.mrb[4].mxu0 }
 0x2d7   :  { %v662_v35 = vpop.f32.mrb[5].mxu0 }
 0x2d8   :  { %v663_v36 = vadd.f32 %v662_v35, %v661_v33  ;;  %v664_v37 = vpop.f32.mrb[6].mxu0 }
 0x2d9   :  { %v665_v38 = vpop.f32.mrb[7].mxu0 }
 0x2da   :  { %v567_v39 = vadd.f32 %v663_v36, %v627_v34 }
 0x2dc   :  { %v644_v40 = vmul.f32 -1.442695, %v567_v39 }
 0x2de   :  { %757 = vpow2.f32 %v644_v40 }
 0x2e8   :  { %v758_v41 = vpop.eup %757 }
 0x2e9   :  { %v575_v42 = vadd.f32 1.0, %v758_v41 }
 0x2eb   :  { %759 = vrcp.f32 %v575_v42 }
 0x2f5   :  { %v760_v43 = vpop.eup %759 }
 0x2f6   :  { %v578_v44 = vmul.f32 12.0, %v760_v43 }
 0x2f8   :  { %580 = vst.msk [vmem:[%s927_s7] sm:$0xff] %vm579_vm1, %v578_v44 }
 0x2f9   :  { %585 = vsyncpa [#allocation3], 1 }

</bundles_post_ra>
